<compile_context>
chip_gen: v6e
topology: v6e:2x2x1
jax: 0.10.0
libtpu: 0.0.40
codegen_flags: <defaults>
</compile_context>

<pallas_src>
import functools

import jax
import jax.numpy as jnp
import numpy as np
from jax import lax
from jax.experimental import pallas as pl
from jax.experimental.pallas import tpu as pltpu

EPS = 1e-5


# ---------------------------------------------------------------------------
# Fused kernel: 1x1 reduce -> grouped 3x3 -> 1x1 expand -> +identity residual
# ---------------------------------------------------------------------------
def _bottleneck_kernel(x_ref, w1_ref, w2_ref, w3_ref, b_ref, m_ref, o_ref, *, W):
    """One image per grid step, channels-first (C, H*W) layout (== NCHW order).

    x_ref : (1, Cin, HW)     input image slab (caller dtype)
    w1_ref: (Cm, Cin)        1x1 reduce, BN1 scale folded into rows
    w2_ref: (9, Cm, Cm)      grouped 3x3 as dense per-tap matrices, BN2 folded
    w3_ref: (Cout, Cm)       1x1 expand, BN3 scale folded into rows
    b_ref : (2*Cm+Cout, 1)   [c1; c2; c3] folded biases (f32)
    m_ref : (9, 1, HW)       0/1 zero-padding masks per tap (f32)
    o_ref : (1, Cout, HW)    output slab
    """
    Cm = w1_ref.shape[0]
    Cout = w3_ref.shape[0]
    HW = x_ref.shape[2]
    cdt = w1_ref.dtype                      # matmul-input (compute) dtype

    x2 = x_ref[0]                           # (Cin, HW)
    c1 = b_ref[0:Cm, :]                     # (Cm, 1) f32
    c2 = b_ref[Cm:2 * Cm, :]
    c3 = b_ref[2 * Cm:2 * Cm + Cout, :]

    # Stage 1: 1x1 reduce (+ folded BN scale) + bias + ReLU, f32 accumulation.
    mid = jnp.dot(w1_ref[...], x2.astype(cdt),
                  preferred_element_type=jnp.float32)
    mid = jnp.maximum(mid + c1, 0.0)        # (Cm, HW) f32

    # Stage 2: grouped 3x3 as 9 accumulated tap matmuls.  A tap at offset
    # (dy, dx) needs mid shifted by dy*W+dx along the flattened H*W lane dim;
    # pltpu.roll does the circular shift on the XLU and the precomputed 0/1
    # mask zeroes positions corresponding to conv zero-padding / row wrap.
    acc = jnp.zeros((Cm, HW), jnp.float32)
    for ky in range(3):
        for kx in range(3):
            t = ky * 3 + kx
            off = (ky - 1) * W + (kx - 1)
            if off == 0:
                src = mid
            else:
                src = pltpu.roll(mid, shift=(-off) % HW, axis=1) * m_ref[t]
            acc = acc + jnp.dot(w2_ref[t], src.astype(cdt),
                                preferred_element_type=jnp.float32)
    y2 = jnp.maximum(acc + c2, 0.0)         # (Cm, HW) f32

    # Stage 3: 1x1 expand (+ folded BN scale) + bias + ReLU.
    y3 = jnp.dot(w3_ref[...], y2.astype(cdt),
                 preferred_element_type=jnp.float32)
    y3 = jnp.maximum(y3 + c3, 0.0)          # (Cout, HW) f32

    # Stage 4: identity residual added AFTER the last ReLU (as in the module).
    o_ref[0] = (y3 + x2.astype(jnp.float32)).astype(o_ref.dtype)


# ---------------------------------------------------------------------------
# Wrapper: one pallas_call for the whole block, NCHW in / NCHW out
# ---------------------------------------------------------------------------
def resnext_bottle_block_forward(x_nchw, prep, *, out_dtype=None,
                                 vmem_limit_bytes=32 * 1024 * 1024):
    """Fused forward.  stride=1, downsample=None (identity residual).

    `prep` comes from prepare_params(); its weight dtype (f32 / bf16) selects
    the matmul-input dtype.  x is read in its own dtype and cast in VMEM.
    """
    N, Cin, H, W = x_nchw.shape
    Cm = prep['w1t'].shape[0]
    Cout = prep['w3t'].shape[0]
    assert Cin == Cout, "identity residual requires Cin == Cout"
    HW = H * W                      # test config: HW = 256, a multiple of 128
    out_dtype = x_nchw.dtype if out_dtype is None else out_dtype

    x3 = x_nchw.reshape(N, Cin, HW)         # free: NCHW is already (N, C, H*W)

    # Per-tap 0/1 masks implementing the conv zero padding in flat H*W layout.
    hh, ww = np.meshgrid(np.arange(H), np.arange(W), indexing='ij')
    masks = np.zeros((9, 1, HW), np.float32)
    for ky in range(3):
        for kx in range(3):
            dy, dx = ky - 1, kx - 1
            valid = ((hh + dy >= 0) & (hh + dy < H) &
                     (ww + dx >= 0) & (ww + dx < W))
            masks[ky * 3 + kx, 0] = valid.reshape(-1).astype(np.float32)
    masks = jnp.asarray(masks)

    w_item = np.dtype(prep['w1t'].dtype).itemsize
    x_item = np.dtype(x3.dtype).itemsize
    o_item = np.dtype(out_dtype).itemsize
    flops = 2 * N * HW * (Cin * Cm + 9 * Cm * Cm + Cm * Cout)
    bytes_accessed = (N * HW * Cin * x_item + N * HW * Cout * o_item
                      + (Cm * Cin + 9 * Cm * Cm + Cout * Cm) * w_item
                      + (2 * Cm + Cout) * 4 + 9 * HW * 4)

    out3 = pl.pallas_call(
        functools.partial(_bottleneck_kernel, W=W),
        out_shape=jax.ShapeDtypeStruct((N, Cout, HW), out_dtype),
        grid_spec=pltpu.PrefetchScalarGridSpec(
            num_scalar_prefetch=0,
            grid=(N,),
            in_specs=[
                pl.BlockSpec((1, Cin, HW), lambda n: (n, 0, 0)),
                pl.BlockSpec((Cm, Cin), lambda n: (0, 0)),
                pl.BlockSpec((9, Cm, Cm), lambda n: (0, 0, 0)),
                pl.BlockSpec((Cout, Cm), lambda n: (0, 0)),
                pl.BlockSpec((2 * Cm + Cout, 1), lambda n: (0, 0)),
                pl.BlockSpec((9, 1, HW), lambda n: (0, 0, 0)),
            ],
            out_specs=pl.BlockSpec((1, Cout, HW), lambda n: (n, 0, 0)),
        ),
        compiler_params=pltpu.CompilerParams(
            dimension_semantics=("parallel",),      # batch across megacore TCs
            vmem_limit_bytes=vmem_limit_bytes,      # tiny footprint; ok on v7x
        ),
        cost_estimate=pl.CostEstimate(flops=flops, transcendentals=0,
                                      bytes_accessed=int(bytes_accessed)),
    )(x3, prep['w1t'], prep['w2_taps'], prep['w3t'], prep['bias'], masks)

    return out3.reshape(N, Cout, H, W)              # free contiguous reshape


# ---------------------------------------------------------------------------
# Parameter init (mirrors the PyTorch module) + kernel-layout preparation
# ---------------------------------------------------------------------------
def init_params(key, in_channel=64, out_channel=64, cardinality=16):
    """Raw params mirroring the PyTorch module: OIHW conv weights, conv bias,
    eval-mode BatchNorm statistics."""
    expansion = 4
    block_channel = in_channel // (cardinality * expansion)
    mid = block_channel * cardinality
    ks = jax.random.split(key, 9)

    def bn(k, c):
        k1, k2, k3, k4 = jax.random.split(k, 4)
        gamma = 0.5 + jax.random.uniform(k1, (c,), jnp.float32)
        beta = 0.1 * jax.random.normal(k2, (c,), jnp.float32)
        mean = 0.1 * jax.random.normal(k3, (c,), jnp.float32)
        var = 0.5 + jax.random.uniform(k4, (c,), jnp.float32)
        return (gamma, beta, mean, var)

    bpg = mid // cardinality
    w1 = jax.random.normal(ks[0], (mid, in_channel, 1, 1), jnp.float32) / np.sqrt(in_channel)
    b1 = 0.1 * jax.random.normal(ks[1], (mid,), jnp.float32)
    w2 = jax.random.normal(ks[3], (mid, bpg, 3, 3), jnp.float32) / np.sqrt(bpg * 9)
    b2 = 0.1 * jax.random.normal(ks[4], (mid,), jnp.float32)
    w3 = jax.random.normal(ks[6], (out_channel, mid, 1, 1), jnp.float32) / np.sqrt(mid)
    b3 = 0.1 * jax.random.normal(ks[7], (out_channel,), jnp.float32)
    return dict(w1=w1, b1=b1, bn1=bn(ks[2], mid),
                w2=w2, b2=b2, bn2=bn(ks[5], mid),
                w3=w3, b3=b3, bn3=bn(ks[8], out_channel),
                cardinality=cardinality)


def prepare_params(raw, dtype=jnp.bfloat16):
    """Fold eval-mode BN into conv weights/biases and lay out for the kernel:
    transposed 1x1 weights, dense per-tap 3x3 matrices, merged bias vector."""
    def fold(bn_p, conv_bias):
        gamma, beta, mean, var = bn_p
        s = gamma / jnp.sqrt(var + EPS)
        return s, beta + s * (conv_bias - mean)

    s1, c1 = fold(raw['bn1'], raw['b1'])
    s2, c2 = fold(raw['bn2'], raw['b2'])
    s3, c3 = fold(raw['bn3'], raw['b3'])

    Cm, Cin = raw['w1'].shape[0], raw['w1'].shape[1]
    Cout = raw['w3'].shape[0]
    bpg = Cm // raw['cardinality']

    w1t = (raw['w1'][:, :, 0, 0] * s1[:, None]).astype(dtype)        # (Cm, Cin)
    w3t = (raw['w3'][:, :, 0, 0] * s3[:, None]).astype(dtype)        # (Cout, Cm)

    # Grouped 3x3 -> dense block-diagonal per-tap matrices (9, Cm_out, Cm_in).
    # NOTE: inflates MXU FLOPs by `cardinality`x; fine while memory-bound.
    w2 = np.asarray(raw['w2'], np.float32)                           # (Cm, bpg, 3, 3)
    w2_taps = np.zeros((9, Cm, Cm), np.float32)
    for o in range(Cm):
        g = o // bpg
        w2_taps[:, o, g * bpg:(g + 1) * bpg] = (
            w2[o].transpose(1, 2, 0).reshape(9, bpg))
    w2_taps = jnp.asarray(w2_taps) * s2[None, :, None]

    bias = jnp.concatenate([c1, c2, c3]).reshape(-1, 1).astype(jnp.float32)
    return dict(w1t=w1t, w2_taps=w2_taps.astype(dtype), w3t=w3t, bias=bias)


# ---------------------------------------------------------------------------
# Pure-JAX reference (NCHW, explicit eval-mode BN) for correctness checking
# ---------------------------------------------------------------------------
def ref_forward(x, raw):
    def bn(y, bn_p):
        gamma, beta, mean, var = bn_p
        inv = gamma / jnp.sqrt(var + EPS)
        return ((y - mean[None, :, None, None]) * inv[None, :, None, None]
                + beta[None, :, None, None])

    def conv(y, w, b, groups=1, pad='VALID'):
        y = lax.conv_general_dilated(
            y, w, window_strides=(1, 1), padding=pad,
            dimension_numbers=('NCHW', 'OIHW', 'NCHW'),
            feature_group_count=groups, precision=lax.Precision.HIGHEST)
        return y + b[None, :, None, None]

    card = raw['cardinality']
    y = jax.nn.relu(bn(conv(x, raw['w1'], raw['b1']), raw['bn1']))
    y = jax.nn.relu(bn(conv(y, raw['w2'], raw['b2'], groups=card,
                            pad=((1, 1), (1, 1))), raw['bn2']))
    y = jax.nn.relu(bn(conv(y, raw['w3'], raw['b3']), raw['bn3']))
    return y + x                                   # residual added after ReLU


if __name__ == "__main__":
    key = jax.random.PRNGKey(0)
    kx, kp = jax.random.split(key)

    # in_channel must be >= cardinality*expansion (= 64) for the module's
    # block_channel computation to be nonzero -> use 64 channels.
    in_channel, out_channel, cardinality = 64, 64, 16
    N, H, W = 2, 16, 16
    x = jax.random.normal(kx, (N, in_channel, H, W), jnp.float32)     # NCHW
    raw = init_params(kp, in_channel, out_channel, cardinality)
    ref = ref_forward(x, raw)

    # f32 weights / f32 activations: tight check of the kernel mechanics.
    prep_f32 = prepare_params(raw, dtype=jnp.float32)
    fwd_f32 = jax.jit(lambda v: resnext_bottle_block_forward(v, prep_f32))
    out_f32 = jax.block_until_ready(fwd_f32(x))
    np.testing.assert_allclose(np.asarray(out_f32), np.asarray(ref),
                               rtol=1e-2, atol=1e-2)

    # bf16 weights + bf16 activations (halved HBM traffic path), f32 epilogues.
    prep_bf16 = prepare_params(raw, dtype=jnp.bfloat16)
    fwd_bf16 = jax.jit(lambda v: resnext_bottle_block_forward(
        v, prep_bf16, out_dtype=jnp.float32))
    out_bf16 = jax.block_until_ready(fwd_bf16(x.astype(jnp.bfloat16)))
    np.testing.assert_allclose(np.asarray(out_bf16), np.asarray(ref),
                               rtol=6e-2, atol=3e-1)

    print("KERNEL_OK")
</pallas_src>

<mosaic_0001>
module attributes {stable_mosaic.version = 11 : i64} {
  func.func @_bottleneck_kernel(%arg0: i32, %arg1: memref<1x64x256xf32, #tpu.memory_space<vmem>>, %arg2: memref<16x64xf32, #tpu.memory_space<vmem>>, %arg3: memref<9x16x16xf32, #tpu.memory_space<vmem>>, %arg4: memref<64x16xf32, #tpu.memory_space<vmem>>, %arg5: memref<96x1xf32, #tpu.memory_space<vmem>>, %arg6: memref<9x1x256xf32, #tpu.memory_space<vmem>>, %arg7: memref<1x64x256xf32, #tpu.memory_space<vmem>>) attributes {dimension_semantics = [#tpu.dimension_semantics<parallel>], iteration_bounds = array<i64: 2>, scalar_prefetch = 0 : i64, scratch_operands = 0 : i64, tpu.core_type = #tpu.core_type<tc>, window_params = [{transform_indices = @transform_0, window_bounds = array<i64: 1, 64, 256>}, {pipeline_mode = #tpu.pipeline_mode<synchronous>, transform_indices = @transform_1, window_bounds = array<i64: 16, 64>}, {pipeline_mode = #tpu.pipeline_mode<synchronous>, transform_indices = @transform_2, window_bounds = array<i64: 9, 16, 16>}, {pipeline_mode = #tpu.pipeline_mode<synchronous>, transform_indices = @transform_3, window_bounds = array<i64: 64, 16>}, {pipeline_mode = #tpu.pipeline_mode<synchronous>, transform_indices = @transform_4, window_bounds = array<i64: 96, 1>}, {pipeline_mode = #tpu.pipeline_mode<synchronous>, transform_indices = @transform_5, window_bounds = array<i64: 9, 1, 256>}, {transform_indices = @transform_6, window_bounds = array<i64: 1, 64, 256>}]} {
    %c0 = arith.constant 0 : index
    %c0_0 = arith.constant 0 : index
    %c0_1 = arith.constant 0 : index
    %0 = vector.load %arg1[%c0, %c0_0, %c0_1] : memref<1x64x256xf32, #tpu.memory_space<vmem>>, vector<1x64x256xf32>
    %1 = vector.shape_cast %0 : vector<1x64x256xf32> to vector<64x256xf32>
    %c0_2 = arith.constant 0 : index
    %c0_3 = arith.constant 0 : index
    %2 = vector.load %arg5[%c0_2, %c0_3] : memref<96x1xf32, #tpu.memory_space<vmem>>, vector<16x1xf32>
    %c16 = arith.constant 16 : index
    %c0_4 = arith.constant 0 : index
    %3 = vector.load %arg5[%c16, %c0_4] : memref<96x1xf32, #tpu.memory_space<vmem>>, vector<16x1xf32>
    %c32 = arith.constant 32 : index
    %c0_5 = arith.constant 0 : index
    %4 = vector.load %arg5[%c32, %c0_5] : memref<96x1xf32, #tpu.memory_space<vmem>>, vector<64x1xf32>
    %c0_6 = arith.constant 0 : index
    %c0_7 = arith.constant 0 : index
    %5 = vector.load %arg2[%c0_6, %c0_7] : memref<16x64xf32, #tpu.memory_space<vmem>>, vector<16x64xf32>
    %cst = arith.constant dense<0.000000e+00> : vector<16x256xf32>
    %6 = tpu.matmul %5, %1, %cst {dimension_numbers = #tpu.dot_dimension_numbers<[1], [0], [0], [1], [0, 0, 1, 1], [], []>} : vector<16x64xf32>, vector<64x256xf32>, vector<16x256xf32> -> vector<16x256xf32>
    %7 = vector.broadcast %2 : vector<16x1xf32> to vector<16x256xf32>
    %8 = arith.addf %6, %7 : vector<16x256xf32>
    %cst_8 = arith.constant 0.000000e+00 : f32
    %9 = vector.broadcast %cst_8 : f32 to vector<16x256xf32>
    %10 = arith.maximumf %8, %9 : vector<16x256xf32>
    %cst_9 = arith.constant 0.000000e+00 : f32
    %11 = vector.broadcast %cst_9 : f32 to vector<16x256xf32>
    %c17_i32 = arith.constant 17 : i32
    %12 = tpu.dynamic_rotate %10 by %c17_i32 dim 1 : vector<16x256xf32>, i32 -> vector<16x256xf32>
    %c0_10 = arith.constant 0 : index
    %c0_11 = arith.constant 0 : index
    %c0_12 = arith.constant 0 : index
    %13 = vector.load %arg6[%c0_10, %c0_11, %c0_12] : memref<9x1x256xf32, #tpu.memory_space<vmem>>, vector<1x1x256xf32>
    %14 = vector.shape_cast %13 : vector<1x1x256xf32> to vector<1x256xf32>
    %15 = vector.broadcast %14 : vector<1x256xf32> to vector<16x256xf32>
    %16 = arith.mulf %12, %15 : vector<16x256xf32>
    %c0_13 = arith.constant 0 : index
    %c0_14 = arith.constant 0 : index
    %c0_15 = arith.constant 0 : index
    %17 = vector.load %arg3[%c0_13, %c0_14, %c0_15] : memref<9x16x16xf32, #tpu.memory_space<vmem>>, vector<1x16x16xf32>
    %18 = vector.shape_cast %17 : vector<1x16x16xf32> to vector<16x16xf32>
    %cst_16 = arith.constant dense<0.000000e+00> : vector<16x256xf32>
    %19 = tpu.matmul %18, %16, %cst_16 {dimension_numbers = #tpu.dot_dimension_numbers<[1], [0], [0], [1], [0, 0, 1, 1], [], []>} : vector<16x16xf32>, vector<16x256xf32>, vector<16x256xf32> -> vector<16x256xf32>
    %20 = arith.addf %11, %19 : vector<16x256xf32>
    %c16_i32 = arith.constant 16 : i32
    %21 = tpu.dynamic_rotate %10 by %c16_i32 dim 1 : vector<16x256xf32>, i32 -> vector<16x256xf32>
    %c1 = arith.constant 1 : index
    %c0_17 = arith.constant 0 : index
    %c0_18 = arith.constant 0 : index
    %22 = vector.load %arg6[%c1, %c0_17, %c0_18] : memref<9x1x256xf32, #tpu.memory_space<vmem>>, vector<1x1x256xf32>
    %23 = vector.shape_cast %22 : vector<1x1x256xf32> to vector<1x256xf32>
    %24 = vector.broadcast %23 : vector<1x256xf32> to vector<16x256xf32>
    %25 = arith.mulf %21, %24 : vector<16x256xf32>
    %c1_19 = arith.constant 1 : index
    %c0_20 = arith.constant 0 : index
    %c0_21 = arith.constant 0 : index
    %26 = vector.load %arg3[%c1_19, %c0_20, %c0_21] : memref<9x16x16xf32, #tpu.memory_space<vmem>>, vector<1x16x16xf32>
    %27 = vector.shape_cast %26 : vector<1x16x16xf32> to vector<16x16xf32>
    %cst_22 = arith.constant dense<0.000000e+00> : vector<16x256xf32>
    %28 = tpu.matmul %27, %25, %cst_22 {dimension_numbers = #tpu.dot_dimension_numbers<[1], [0], [0], [1], [0, 0, 1, 1], [], []>} : vector<16x16xf32>, vector<16x256xf32>, vector<16x256xf32> -> vector<16x256xf32>
    %29 = arith.addf %20, %28 : vector<16x256xf32>
    %c15_i32 = arith.constant 15 : i32
    %30 = tpu.dynamic_rotate %10 by %c15_i32 dim 1 : vector<16x256xf32>, i32 -> vector<16x256xf32>
    %c2 = arith.constant 2 : index
    %c0_23 = arith.constant 0 : index
    %c0_24 = arith.constant 0 : index
    %31 = vector.load %arg6[%c2, %c0_23, %c0_24] : memref<9x1x256xf32, #tpu.memory_space<vmem>>, vector<1x1x256xf32>
    %32 = vector.shape_cast %31 : vector<1x1x256xf32> to vector<1x256xf32>
    %33 = vector.broadcast %32 : vector<1x256xf32> to vector<16x256xf32>
    %34 = arith.mulf %30, %33 : vector<16x256xf32>
    %c2_25 = arith.constant 2 : index
    %c0_26 = arith.constant 0 : index
    %c0_27 = arith.constant 0 : index
    %35 = vector.load %arg3[%c2_25, %c0_26, %c0_27] : memref<9x16x16xf32, #tpu.memory_space<vmem>>, vector<1x16x16xf32>
    %36 = vector.shape_cast %35 : vector<1x16x16xf32> to vector<16x16xf32>
    %cst_28 = arith.constant dense<0.000000e+00> : vector<16x256xf32>
    %37 = tpu.matmul %36, %34, %cst_28 {dimension_numbers = #tpu.dot_dimension_numbers<[1], [0], [0], [1], [0, 0, 1, 1], [], []>} : vector<16x16xf32>, vector<16x256xf32>, vector<16x256xf32> -> vector<16x256xf32>
    %38 = arith.addf %29, %37 : vector<16x256xf32>
    %c1_i32 = arith.constant 1 : i32
    %39 = tpu.dynamic_rotate %10 by %c1_i32 dim 1 : vector<16x256xf32>, i32 -> vector<16x256xf32>
    %c3 = arith.constant 3 : index
    %c0_29 = arith.constant 0 : index
    %c0_30 = arith.constant 0 : index
    %40 = vector.load %arg6[%c3, %c0_29, %c0_30] : memref<9x1x256xf32, #tpu.memory_space<vmem>>, vector<1x1x256xf32>
    %41 = vector.shape_cast %40 : vector<1x1x256xf32> to vector<1x256xf32>
    %42 = vector.broadcast %41 : vector<1x256xf32> to vector<16x256xf32>
    %43 = arith.mulf %39, %42 : vector<16x256xf32>
    %c3_31 = arith.constant 3 : index
    %c0_32 = arith.constant 0 : index
    %c0_33 = arith.constant 0 : index
    %44 = vector.load %arg3[%c3_31, %c0_32, %c0_33] : memref<9x16x16xf32, #tpu.memory_space<vmem>>, vector<1x16x16xf32>
    %45 = vector.shape_cast %44 : vector<1x16x16xf32> to vector<16x16xf32>
    %cst_34 = arith.constant dense<0.000000e+00> : vector<16x256xf32>
    %46 = tpu.matmul %45, %43, %cst_34 {dimension_numbers = #tpu.dot_dimension_numbers<[1], [0], [0], [1], [0, 0, 1, 1], [], []>} : vector<16x16xf32>, vector<16x256xf32>, vector<16x256xf32> -> vector<16x256xf32>
    %47 = arith.addf %38, %46 : vector<16x256xf32>
    %c4 = arith.constant 4 : index
    %c0_35 = arith.constant 0 : index
    %c0_36 = arith.constant 0 : index
    %48 = vector.load %arg3[%c4, %c0_35, %c0_36] : memref<9x16x16xf32, #tpu.memory_space<vmem>>, vector<1x16x16xf32>
    %49 = vector.shape_cast %48 : vector<1x16x16xf32> to vector<16x16xf32>
    %cst_37 = arith.constant dense<0.000000e+00> : vector<16x256xf32>
    %50 = tpu.matmul %49, %10, %cst_37 {dimension_numbers = #tpu.dot_dimension_numbers<[1], [0], [0], [1], [0, 0, 1, 1], [], []>} : vector<16x16xf32>, vector<16x256xf32>, vector<16x256xf32> -> vector<16x256xf32>
    %51 = arith.addf %47, %50 : vector<16x256xf32>
    %c255_i32 = arith.constant 255 : i32
    %52 = tpu.dynamic_rotate %10 by %c255_i32 dim 1 : vector<16x256xf32>, i32 -> vector<16x256xf32>
    %c5 = arith.constant 5 : index
    %c0_38 = arith.constant 0 : index
    %c0_39 = arith.constant 0 : index
    %53 = vector.load %arg6[%c5, %c0_38, %c0_39] : memref<9x1x256xf32, #tpu.memory_space<vmem>>, vector<1x1x256xf32>
    %54 = vector.shape_cast %53 : vector<1x1x256xf32> to vector<1x256xf32>
    %55 = vector.broadcast %54 : vector<1x256xf32> to vector<16x256xf32>
    %56 = arith.mulf %52, %55 : vector<16x256xf32>
    %c5_40 = arith.constant 5 : index
    %c0_41 = arith.constant 0 : index
    %c0_42 = arith.constant 0 : index
    %57 = vector.load %arg3[%c5_40, %c0_41, %c0_42] : memref<9x16x16xf32, #tpu.memory_space<vmem>>, vector<1x16x16xf32>
    %58 = vector.shape_cast %57 : vector<1x16x16xf32> to vector<16x16xf32>
    %cst_43 = arith.constant dense<0.000000e+00> : vector<16x256xf32>
    %59 = tpu.matmul %58, %56, %cst_43 {dimension_numbers = #tpu.dot_dimension_numbers<[1], [0], [0], [1], [0, 0, 1, 1], [], []>} : vector<16x16xf32>, vector<16x256xf32>, vector<16x256xf32> -> vector<16x256xf32>
    %60 = arith.addf %51, %59 : vector<16x256xf32>
    %c241_i32 = arith.constant 241 : i32
    %61 = tpu.dynamic_rotate %10 by %c241_i32 dim 1 : vector<16x256xf32>, i32 -> vector<16x256xf32>
    %c6 = arith.constant 6 : index
    %c0_44 = arith.constant 0 : index
    %c0_45 = arith.constant 0 : index
    %62 = vector.load %arg6[%c6, %c0_44, %c0_45] : memref<9x1x256xf32, #tpu.memory_space<vmem>>, vector<1x1x256xf32>
    %63 = vector.shape_cast %62 : vector<1x1x256xf32> to vector<1x256xf32>
    %64 = vector.broadcast %63 : vector<1x256xf32> to vector<16x256xf32>
    %65 = arith.mulf %61, %64 : vector<16x256xf32>
    %c6_46 = arith.constant 6 : index
    %c0_47 = arith.constant 0 : index
    %c0_48 = arith.constant 0 : index
    %66 = vector.load %arg3[%c6_46, %c0_47, %c0_48] : memref<9x16x16xf32, #tpu.memory_space<vmem>>, vector<1x16x16xf32>
    %67 = vector.shape_cast %66 : vector<1x16x16xf32> to vector<16x16xf32>
    %cst_49 = arith.constant dense<0.000000e+00> : vector<16x256xf32>
    %68 = tpu.matmul %67, %65, %cst_49 {dimension_numbers = #tpu.dot_dimension_numbers<[1], [0], [0], [1], [0, 0, 1, 1], [], []>} : vector<16x16xf32>, vector<16x256xf32>, vector<16x256xf32> -> vector<16x256xf32>
    %69 = arith.addf %60, %68 : vector<16x256xf32>
    %c240_i32 = arith.constant 240 : i32
    %70 = tpu.dynamic_rotate %10 by %c240_i32 dim 1 : vector<16x256xf32>, i32 -> vector<16x256xf32>
    %c7 = arith.constant 7 : index
    %c0_50 = arith.constant 0 : index
    %c0_51 = arith.constant 0 : index
    %71 = vector.load %arg6[%c7, %c0_50, %c0_51] : memref<9x1x256xf32, #tpu.memory_space<vmem>>, vector<1x1x256xf32>
    %72 = vector.shape_cast %71 : vector<1x1x256xf32> to vector<1x256xf32>
    %73 = vector.broadcast %72 : vector<1x256xf32> to vector<16x256xf32>
    %74 = arith.mulf %70, %73 : vector<16x256xf32>
    %c7_52 = arith.constant 7 : index
    %c0_53 = arith.constant 0 : index
    %c0_54 = arith.constant 0 : index
    %75 = vector.load %arg3[%c7_52, %c0_53, %c0_54] : memref<9x16x16xf32, #tpu.memory_space<vmem>>, vector<1x16x16xf32>
    %76 = vector.shape_cast %75 : vector<1x16x16xf32> to vector<16x16xf32>
    %cst_55 = arith.constant dense<0.000000e+00> : vector<16x256xf32>
    %77 = tpu.matmul %76, %74, %cst_55 {dimension_numbers = #tpu.dot_dimension_numbers<[1], [0], [0], [1], [0, 0, 1, 1], [], []>} : vector<16x16xf32>, vector<16x256xf32>, vector<16x256xf32> -> vector<16x256xf32>
    %78 = arith.addf %69, %77 : vector<16x256xf32>
    %c239_i32 = arith.constant 239 : i32
    %79 = tpu.dynamic_rotate %10 by %c239_i32 dim 1 : vector<16x256xf32>, i32 -> vector<16x256xf32>
    %c8 = arith.constant 8 : index
    %c0_56 = arith.constant 0 : index
    %c0_57 = arith.constant 0 : index
    %80 = vector.load %arg6[%c8, %c0_56, %c0_57] : memref<9x1x256xf32, #tpu.memory_space<vmem>>, vector<1x1x256xf32>
    %81 = vector.shape_cast %80 : vector<1x1x256xf32> to vector<1x256xf32>
    %82 = vector.broadcast %81 : vector<1x256xf32> to vector<16x256xf32>
    %83 = arith.mulf %79, %82 : vector<16x256xf32>
    %c8_58 = arith.constant 8 : index
    %c0_59 = arith.constant 0 : index
    %c0_60 = arith.constant 0 : index
    %84 = vector.load %arg3[%c8_58, %c0_59, %c0_60] : memref<9x16x16xf32, #tpu.memory_space<vmem>>, vector<1x16x16xf32>
    %85 = vector.shape_cast %84 : vector<1x16x16xf32> to vector<16x16xf32>
    %cst_61 = arith.constant dense<0.000000e+00> : vector<16x256xf32>
    %86 = tpu.matmul %85, %83, %cst_61 {dimension_numbers = #tpu.dot_dimension_numbers<[1], [0], [0], [1], [0, 0, 1, 1], [], []>} : vector<16x16xf32>, vector<16x256xf32>, vector<16x256xf32> -> vector<16x256xf32>
    %87 = arith.addf %78, %86 : vector<16x256xf32>
    %88 = vector.broadcast %3 : vector<16x1xf32> to vector<16x256xf32>
    %89 = arith.addf %87, %88 : vector<16x256xf32>
    %cst_62 = arith.constant 0.000000e+00 : f32
    %90 = vector.broadcast %cst_62 : f32 to vector<16x256xf32>
    %91 = arith.maximumf %89, %90 : vector<16x256xf32>
    %c0_63 = arith.constant 0 : index
    %c0_64 = arith.constant 0 : index
    %92 = vector.load %arg4[%c0_63, %c0_64] : memref<64x16xf32, #tpu.memory_space<vmem>>, vector<64x16xf32>
    %cst_65 = arith.constant dense<0.000000e+00> : vector<64x256xf32>
    %93 = tpu.matmul %92, %91, %cst_65 {dimension_numbers = #tpu.dot_dimension_numbers<[1], [0], [0], [1], [0, 0, 1, 1], [], []>} : vector<64x16xf32>, vector<16x256xf32>, vector<64x256xf32> -> vector<64x256xf32>
    %94 = vector.broadcast %4 : vector<64x1xf32> to vector<64x256xf32>
    %95 = arith.addf %93, %94 : vector<64x256xf32>
    %cst_66 = arith.constant 0.000000e+00 : f32
    %96 = vector.broadcast %cst_66 : f32 to vector<64x256xf32>
    %97 = arith.maximumf %95, %96 : vector<64x256xf32>
    %98 = arith.addf %97, %1 : vector<64x256xf32>
    %c0_67 = arith.constant 0 : index
    %c0_68 = arith.constant 0 : index
    %c0_69 = arith.constant 0 : index
    %99 = vector.load %arg7[%c0_67, %c0_68, %c0_69] : memref<1x64x256xf32, #tpu.memory_space<vmem>>, vector<1x64x256xf32>
    %100 = vector.shape_cast %99 : vector<1x64x256xf32> to vector<64x256xf32>
    %101 = vector.shape_cast %98 : vector<64x256xf32> to vector<1x64x256xf32>
    tpu.vector_store %arg7[%c0_67, %c0_68, %c0_69], %101 {strides = array<i32>} : memref<1x64x256xf32, #tpu.memory_space<vmem>>, vector<1x64x256xf32>,
    return
  }
  func.func @transform_0(%arg0: i32) -> (i32, i32, i32) {
    %c0_i32 = arith.constant 0 : i32
    %c0_i32_0 = arith.constant 0 : i32
    %c0_i32_1 = arith.constant 0 : i32
    return %arg0, %c0_i32, %c0_i32_0 : i32, i32, i32
  }
  func.func @transform_1(%arg0: i32) -> (i32, i32) {
    %c0_i32 = arith.constant 0 : i32
    %c0_i32_0 = arith.constant 0 : i32
    %c0_i32_1 = arith.constant 0 : i32
    return %c0_i32, %c0_i32_0 : i32, i32
  }
  func.func @transform_2(%arg0: i32) -> (i32, i32, i32) {
    %c0_i32 = arith.constant 0 : i32
    %c0_i32_0 = arith.constant 0 : i32
    %c0_i32_1 = arith.constant 0 : i32
    %c0_i32_2 = arith.constant 0 : i32
    return %c0_i32, %c0_i32_0, %c0_i32_1 : i32, i32, i32
  }
  func.func @transform_3(%arg0: i32) -> (i32, i32) {
    %c0_i32 = arith.constant 0 : i32
    %c0_i32_0 = arith.constant 0 : i32
    %c0_i32_1 = arith.constant 0 : i32
    return %c0_i32, %c0_i32_0 : i32, i32
  }
  func.func @transform_4(%arg0: i32) -> (i32, i32) {
    %c0_i32 = arith.constant 0 : i32
    %c0_i32_0 = arith.constant 0 : i32
    %c0_i32_1 = arith.constant 0 : i32
    return %c0_i32, %c0_i32_0 : i32, i32
  }
  func.func @transform_5(%arg0: i32) -> (i32, i32, i32) {
    %c0_i32 = arith.constant 0 : i32
    %c0_i32_0 = arith.constant 0 : i32
    %c0_i32_1 = arith.constant 0 : i32
    %c0_i32_2 = arith.constant 0 : i32
    return %c0_i32, %c0_i32_0, %c0_i32_1 : i32, i32, i32
  }
  func.func @transform_6(%arg0: i32) -> (i32, i32, i32) {
    %c0_i32 = arith.constant 0 : i32
    %c0_i32_0 = arith.constant 0 : i32
    %c0_i32_1 = arith.constant 0 : i32
    return %arg0, %c0_i32, %c0_i32_0 : i32, i32, i32
  }
}

</mosaic_0001>

<bundles_post_ra>
// kernel: _lambda_.1
= control target key start
LH: loop header
LB: loop body
LE: loop exit
PB: predicated region body
PF: predicated region fallthrough
CT: control target
= control target key end

     0   :  { %s1873_s21 = smov 0   ;;  %s2356_s0 = inlined_call_operand.vmem [shape: f32[2,64,256], index: 0, kind: input, shape index: {}]   ;;  %s2357_s1 = inlined_call_operand.vmem [shape: f32[16,64], index: 1, kind: input, shape index: {}]   ;;  %s2358_s2 = inlined_call_operand.vmem [shape: f32[9,16,16], index: 2, kind: input, shape index: {}]   ;;  %s2359_s3 = inlined_call_operand.vmem [shape: f32[64,16], index: 3, kind: input, shape index: {}]   ;;  %s2360_s4 = inlined_call_operand.vmem [shape: f32[96,1], index: 4, kind: input, shape index: {}]   ;;  %s2361_s5 = inlined_call_operand.vmem [shape: f32[9,1,256], index: 5, kind: input, shape index: {}]   ;;  %s2362_s6 = inlined_call_operand.vmem [shape: f32[2,64,256], index: 6, kind: output, shape index: {}]  }
   0x1 LB: > { %s1729_s22 = sadd.s32 4294967295, %s1826_s21   ;;  %p1733_p0 = scmp.ge.s32.totalorder %s1826_s21, 1  ;;  %s1826_s21 = sphi %s1873_s21, %s16_s21  }
   0x2   : > { %p212_p1 = scmp.lt.s32.totalorder %s1826_s21, 3 }
   0x4   : > { %p213_p2 = pnand %p1733_p0, %p212_p1 }
   0x5   : > { %p242_p3 = scmp.lt.s32.totalorder (!%p213_p2), %s1729_s22, 1  ;;  %s1830_s11 = smov (!%p213_p2), 16  }
   0x6   : > { %216 = sbr.rel (%p213_p2) target bundleno = 842 (0x34a), region = 44  ;;  %s1831_s12 = smov (!%p213_p2), 17  }
   0x7   : > { %s1832_s13 = smov (!%p213_p2), 15   ;;  %s1833_s14 = smov (!%p213_p2), 1  }
   0x8   : > { %s1834_s15 = smov (!%p213_p2), 127   ;;  %s1835_s16 = smov (!%p213_p2), 113  }
   0x9   : > { %s1836_s17 = smov (!%p213_p2), 112   ;;  %s1837_s18 = smov (!%p213_p2), 111  }
   0xb   : > { %v1828_v0 = vmov 0.0   ;;  %v1829_v1 = vmov 0   ;;  %v269_v2 = vld [vmem:[%s2360_s4 + $0x8] sm:$0xff]  ;;  %s2364_s22 = smov (!%p242_p3, %s1729_s22), 1  ;;  %v268_v3 = vld [vmem:[%s2360_s4] sm:$0xff]  ;;  %vm292_vm0 = vcmask 523264   ;;  %v388_v51 = vlaneseq }
   0xc   : > { %363 = vmatprep.mubr.f32.mxu0 %v1828_v0  ;;  %1815 = vset.pattern.permute.xlu0 %v1829_v1  ;;  %s1791_s27 = sshll.u32 %s2364_s22, 7  ;;  %v280_v20 = vld [vmem:[%s2357_s1] sm:$0xff]  ;;  %v281_v21 = vld [vmem:[%s2357_s1 + $0x8] sm:$0xff]  ;;  %v271_v36 = vld [vmem:[%s2360_s4 + $0x18] sm:$0xff]  ;;  %vm446_vm2 = vcmask 130048  }
   0xd   : > { %289 = vperm.xlu0 %1815, %v269_v2   ;;  %517 = vmatprep.mubr.f32.mxu1 %v1828_v0  ;;  %s1897_s30 = scalar_lea.vmem %s2356_s0, %s1791_s27  ;;  %v272_v37 = vld [vmem:[%s2360_s4 + $0x20] sm:$0xff]  ;;  %v274_v38 = vld [vmem:[%s2360_s4 + $0x30] sm:$0xff]  ;;  %v273_v42 = vld [vmem:[%s2360_s4 + $0x28] sm:$0xff]  ;;  %v398_v54 = vshrl.u32 %v388_v51, 7  ;;  %v2040_v56 = vand.u32 127, %v388_v51  ;;  %s2315_s9 = scalar_lea.vmem %s2362_s6, %s1791_s27 }
   0xe   : > { %1816 = vset.pattern.permute.xlu1 %v1829_v1  ;;  %v267_v4 = vld [vmem:[%s1897_s30 + $0x78] sm:$0xff]  ;;  %v1901_v5 = vld [vmem:[%s1897_s30 + $0x70] sm:$0xff]  ;;  %v1904_v6 = vld [vmem:[%s1897_s30 + $0x68] sm:$0xff] }
   0xf   : > { %315 = vmatprep.subr.mxu0 %v267_v4  ;;  %v1907_v7 = vld [vmem:[%s1897_s30 + $0x60] sm:$0xff]  ;;  %v1911_v8 = vld [vmem:[%s1897_s30 + $0x58] sm:$0xff]  ;;  %v1915_v9 = vld [vmem:[%s1897_s30 + $0x50] sm:$0xff]  ;;  %v2044_v58 = vsub.s32 0, %v398_v54  ;;  %v2046_v59 = vsub.s32 1, %v398_v54  ;;  %vm421_vm1 = vcmp.lt.s32.totalorder %v2040_v56, 16 }
  0x10   : > { %316 = vmatpush1.msra.mxu0 %v1901_v5  ;;  %v261_v10 = vld [vmem:[%s1897_s30 + $0x48] sm:$0xff]  ;;  %v260_v11 = vld [vmem:[%s1897_s30 + $0x40] sm:$0xff]  ;;  %v1923_v12 = vld [vmem:[%s1897_s30 + $0x38] sm:$0xff]  ;;  %vm390_vm3 = vcmp.lt.s32.totalorder %v2040_v56, 17  ;;  %vm621_vm4 = vcmp.lt.s32.totalorder %v2040_v56, 15  ;;  %vm741_vm5 = vcmp.lt.s32.totalorder %v2040_v56, 1 }
  0x11   : > { %284 = vperm.xlu0 %1815, %v268_v3   ;;  %317 = vmatprep.subr.mxu0 %v1904_v6  ;;  %v1926_v13 = vld [vmem:[%s1897_s30 + $0x30] sm:$0xff]  ;;  %v1929_v14 = vld [vmem:[%s1897_s30 + $0x28] sm:$0xff]  ;;  %v1933_v15 = vld [vmem:[%s1897_s30 + $0x20] sm:$0xff]  ;;  %vm951_vm6 = vcmp.lt.s32.totalorder %v2040_v56, 127  ;;  %vm1071_vm7 = vcmp.lt.s32.totalorder %v2040_v56, 113  ;;  %vm1191_vm8 = vcmp.lt.s32.totalorder %v2040_v56, 112 }
  0x12   : > { %318 = vmatpush1.msra.mxu0 %v1907_v7  ;;  %v1937_v16 = vld [vmem:[%s1897_s30 + $0x18] sm:$0xff]  ;;  %v1941_v17 = vld [vmem:[%s1897_s30 + $0x10] sm:$0xff]  ;;  %v1945_v18 = vld [vmem:[%s1897_s30 + $0x8] sm:$0xff]  ;;  %vm1311_vm9 = vcmp.lt.s32.totalorder %v2040_v56, 111 }
  0x13   : > { %319 = vmatprep.subr.mxu0 %v1911_v8  ;;  %v1949_v19 = vld [vmem:[%s1897_s30] sm:$0xff]  ;;  %v270_v40 = vld [vmem:[%s2360_s4 + $0x10] sm:$0xff]  ;;  %v275_v43 = vld [vmem:[%s2360_s4 + $0x38] sm:$0xff] }
  0x14   : > { %320 = vmatpush1.msra.mxu0 %v1915_v9  ;;  %v276_v39 = vld [vmem:[%s2360_s4 + $0x40] sm:$0xff]  ;;  %v278_v41 = vld [vmem:[%s2360_s4 + $0x50] sm:$0xff]  ;;  %v277_v44 = vld [vmem:[%s2360_s4 + $0x48] sm:$0xff] }
  0x15   : > { %321 = vmatprep.subr.mxu0 %v261_v10  ;;  %v279_v45 = vld [vmem:[%s2360_s4 + $0x58] sm:$0xff]  ;;  %v1740_v61 = vld [vmem:[%s2361_s5 + $0x2] sm:$0x3] }
  0x16   : > { %322 = vmatpush1.msra.mxu0 %v260_v11  ;;  %v432_v63 = vrot.slane %v1740_v61, %v2044_v58  ;;  %v436_v2 = vrot.slane %v1740_v61, %v2046_v59  ;;  %v1777_v56 = vld [vmem:[%s2358_s2 + $0x80] sm:$0xff] }
  0x17   : > { %323 = vmatprep.subr.mxu0 %v1923_v12 }
  0x18   : > { %324 = vmatpush1.msra.mxu0 %v1926_v13 }
  0x19   : > { %325 = vmatprep.subr.mxu0 %v1929_v14 }
  0x1a   : > { %326 = vmatpush1.msra.mxu0 %v1933_v15 }
  0x1b   : > { %327 = vmatprep.subr.mxu0 %v1937_v16 }
  0x1c   : > { %328 = vmatpush1.msra.mxu0 %v1941_v17 }
  0x1d   : > { %329 = vmatprep.subr.mxu0 %v1945_v18 }
  0x1e   : > { %330 = vmatpush1.msra.mxu0 %v1949_v19 }
  0x1f   : > { %1738 = vmatmul.mubr.msk.f32.vlgmr.msra.gmra.mxu0 %vm292_vm0, %v280_v20 }
  0x20   : > { %369 = vmatprep.mubr.f32.mxu0 %v1828_v0 }
  0x23   : > { %1739 = vmatmul.mubr.msk.f32.gmra.mxu0 %vm292_vm0, %v281_v21 }
  0x24   : > { %836 = vmatprep.mubr.f32.mxu0 %v1828_v0 }
  0x88   : > { %v290_v22 = vpop.permute.xlu0 %289 }
  0x8c   : > { %v285_v23 = vpop.permute.xlu0 %284 }
  0xdf   : > { %v365_v24 = vpop.f32.mrf.mxu0 }
  0xe0   : > { %v366_v25 = vadd.f32 %v365_v24, %v285_v23 }
  0xe1   : > { %v367_v26 = vpop.f32.mrf.mxu0 }
  0xe2   : > { %v1962_v27 = vmax.f32 %v366_v25, 0.0  ;;  %v368_v28 = vadd.f32 %v367_v26, %v285_v23  ;;  %v395_v26 = vld [vmem:[%s2361_s5] sm:$0x3] }
  0xe3   : > { %v371_v30 = vpop.f32.mrf.mxu0 }
  0xe4   : > { %v1964_v29 = vmax.f32 %v368_v28, 0.0  ;;  %413 = vrot.lane.b32.xlu0 %v1962_v27, %s1830_s11  ;;  %v372_v31 = vadd.f32 %v371_v30, %v290_v22  ;;  %v1741_v28 = vld [vmem:[%s2358_s2 + $0x10] sm:$0xff] }
  0xe5   : > { %v373_v32 = vpop.f32.mrf.mxu0 }
  0xe6   : > { %417 = vrot.lane.b32.xlu1 %v1964_v29, %s1830_s11  ;;  %v1974_v33 = vmax.f32 %v372_v31, 0.0  ;;  %v374_v34 = vadd.f32 %v373_v32, %v290_v22  ;;  %v400_v31 = vrot.slane %v395_v26, %v2044_v58  ;;  %v404_v32 = vrot.slane %v395_v26, %v2046_v59  ;;  %v1761_v26 = vld [vmem:[%s2361_s5 + $0xa] sm:$0x3] }
  0xe8   : > { %380 = vrot.lane.b32.xlu0 %v1962_v27, %s1831_s12  ;;  %v1978_v35 = vmax.f32 %v374_v34, 0.0 }
  0xea   : > { %384 = vrot.lane.b32.xlu1 %v1964_v29, %s1831_s12 }
  0xec   : > { %613 = vrot.lane.b32.xlu0 %v1962_v27, %s1832_s13 }
  0xee   : > { %617 = vrot.lane.b32.xlu1 %v1964_v29, %s1832_s13 }
  0xf0   : > { %733 = vrot.lane.b32.xlu0 %v1962_v27, %s1833_s14 }
  0xf2   : > { %737 = vrot.lane.b32.xlu1 %v1964_v29, %s1833_s14 }
  0xf4   : > { %943 = vrot.lane.b32.xlu0 %v1962_v27, %s1834_s15 }
  0xf6   : > { %415 = vrot.lane.b32.xlu1 %v1974_v33, %s1830_s11 }
  0xf8   : > { %382 = vrot.lane.b32.xlu0 %v1974_v33, %s1831_s12 }
  0xfa   : > { %419 = vrot.lane.b32.xlu1 %v1978_v35, %s1830_s11 }
  0xfc   : > { %615 = vrot.lane.b32.xlu0 %v1974_v33, %s1832_s13 }
  0xfe   : > { %947 = vrot.lane.b32.xlu1 %v1964_v29, %s1834_s15 }
 0x100   : > { %735 = vrot.lane.b32.xlu0 %v1974_v33, %s1833_s14 }
 0x102   : > { %386 = vrot.lane.b32.xlu1 %v1978_v35, %s1831_s12 }
 0x104   : > { %945 = vrot.lane.b32.xlu0 %v1974_v33, %s1834_s15 }
 0x106   : > { %1067 = vrot.lane.b32.xlu1 %v1964_v29, %s1835_s16 }
 0x108   : > { %1065 = vrot.lane.b32.xlu0 %v1974_v33, %s1835_s16 }
 0x10a   : > { %619 = vrot.lane.b32.xlu1 %v1978_v35, %s1832_s13 }
 0x10c   : > { %1063 = vrot.lane.b32.xlu0 %v1962_v27, %s1835_s16 }
 0x10e   : > { %1187 = vrot.lane.b32.xlu1 %v1964_v29, %s1836_s17 }
 0x110   : > { %1185 = vrot.lane.b32.xlu0 %v1974_v33, %s1836_s17 }
 0x112   : > { %739 = vrot.lane.b32.xlu1 %v1978_v35, %s1833_s14 }
 0x114   : > { %1183 = vrot.lane.b32.xlu0 %v1962_v27, %s1836_s17 }
 0x116   : > { %949 = vrot.lane.b32.xlu1 %v1978_v35, %s1834_s15 }
 0x118   : > { %1305 = vrot.lane.b32.xlu0 %v1974_v33, %s1837_s18 }
 0x11a   : > { %1069 = vrot.lane.b32.xlu1 %v1978_v35, %s1835_s16 }
 0x11c   : > { %1303 = vrot.lane.b32.xlu0 %v1962_v27, %s1837_s18 }
 0x11e   : > { %1189 = vrot.lane.b32.xlu1 %v1978_v35, %s1836_s17 }
 0x120   : > { %1430 = vperm.xlu0 %1815, %v271_v36  }
 0x122   : > { %1309 = vrot.lane.b32.xlu1 %v1978_v35, %s1837_s18 }
 0x124   : > { %1451 = vperm.xlu0 %1815, %v272_v37  }
 0x126   : > { %1307 = vrot.lane.b32.xlu1 %v1964_v29, %s1837_s18 }
 0x128   : > { %1461 = vperm.xlu0 %1815, %v274_v38  }
 0x12a   : > { %1425 = vperm.xlu1 %1816, %v270_v40  }
 0x12c   : > { %1471 = vperm.xlu0 %1815, %v276_v39   ;;  %v1742_v39 = vld [vmem:[%s2358_s2 + $0x18] sm:$0xff] }
 0x12e   : > { %1456 = vperm.xlu1 %1816, %v273_v42  }
 0x130   : > { %1481 = vperm.xlu0 %1815, %v278_v41  }
 0x132   : > { %1466 = vperm.xlu1 %1816, %v275_v43  }
 0x136   : > { %1476 = vperm.xlu1 %1816, %v277_v44  }
 0x13a   : > { %1486 = vperm.xlu1 %1816, %v279_v45  }
 0x156   : > { %v414_v46 = vpop.permute.xlu0 %413 }
 0x158   : > { %v418_v47 = vpop.permute.xlu1 %417 }
 0x159   : > { %v422_v3 = vsel %vm421_vm1, %v414_v46, %v418_v47  ;;  %v424_v11 = vsel %vm421_vm1, %v418_v47, %v414_v46  ;;  %v1747_v47 = vld [vmem:[%s2361_s5 + $0x4] sm:$0x3] }
 0x15a   : > { %v381_v48 = vpop.permute.xlu0 %380  ;;  %v440_v24 = vmul.f32 %v436_v2, %v422_v3  ;;  %v439_v25 = vmul.f32 %v432_v63, %v424_v11  ;;  %v632_v51 = vrot.slane %v1747_v47, %v2044_v58  ;;  %v636_v54 = vrot.slane %v1747_v47, %v2046_v59 }
 0x15c   : > { %v385_v49 = vpop.permute.xlu1 %384 }
 0x15d   : > { %v391_v36 = vsel %vm390_vm3, %v381_v48, %v385_v49  ;;  %v393_v40 = vsel %vm390_vm3, %v385_v49, %v381_v48  ;;  %v411_v48 = vld [vmem:[%s2358_s2] sm:$0xff] }
 0x15e   : > { %v2032_v50 = vpop.permute.xlu0 %613  ;;  %v408_v44 = vmul.f32 %v404_v32, %v391_v36  ;;  %v407_v46 = vmul.f32 %v400_v31, %v393_v40  ;;  %v1766_v40 = vld [vmem:[%s2361_s5 + $0xc] sm:$0x3] }
 0x15f   : > { %v1082_v47 = vrot.slane %v1766_v40, %v2044_v58 }
 0x160   : > { %v2034_v52 = vpop.permute.xlu1 %617 }
 0x161   : > { %v622_v61 = vsel %vm621_vm4, %v2032_v50, %v2034_v52 }
 0x162   : > { %v2036_v53 = vpop.permute.xlu0 %733 }
 0x164   : > { %v2038_v55 = vpop.permute.xlu1 %737 }
 0x166   : > { %v2042_v57 = vpop.permute.xlu0 %943 }
 0x168   : > { %v416_v60 = vpop.permute.xlu1 %415 }
 0x16a   : > { %v383_v62 = vpop.permute.xlu0 %382 }
 0x16c   : > { %v420_v1 = vpop.permute.xlu1 %419 }
 0x16d   : > { %v425_v4 = vsel %vm421_vm1, %v420_v1, %v416_v60  ;;  %v423_v10 = vsel %vm421_vm1, %v416_v60, %v420_v1  ;;  %v412_v1 = vld [vmem:[%s2358_s2 + $0x8] sm:$0xff] }
 0x16e   : > { %v616_v20 = vpop.permute.xlu0 %615  ;;  %v442_v21 = vmul.f32 %v436_v2, %v423_v10  ;;  %v441_v22 = vmul.f32 %v432_v63, %v425_v4  ;;  %v624_v2 = vsel %vm621_vm4, %v2034_v52, %v2032_v50  ;;  %v640_v10 = vmul.f32 %v636_v54, %v622_v61  ;;  %v1748_v50 = vld [vmem:[%s2358_s2 + $0x20] sm:$0xff] }
 0x170   : > { %481 = vmatprep.subr.mxu1 %v442_v21  ;;  %v2054_v23 = vpop.permute.xlu1 %947 }
 0x171   : > { %482 = vmatpush1.msra.mxu1 %v441_v22  ;;  %v1752_v22 = vld [vmem:[%s2361_s5 + $0x6] sm:$0x3] }
 0x172   : > { %483 = vmatprep.subr.mxu1 %v440_v24  ;;  %v2063_v30 = vpop.permute.xlu0 %735  ;;  %v752_v52 = vrot.slane %v1752_v22, %v2044_v58  ;;  %v756_v24 = vrot.slane %v1752_v22, %v2046_v59 }
 0x173   : > { %484 = vmatpush1.msra.mxu1 %v439_v25  ;;  %v742_v25 = vsel %vm741_vm5, %v2036_v53, %v2038_v55 }
 0x174   : > { %v387_v34 = vpop.permute.xlu1 %386  ;;  %1743 = vmatmul.mubr.msk.f32.vlgmr.msra.gmra.mxu1 %vm446_vm2, %v1741_v28 }
 0x175   : > { %v392_v37 = vsel %vm390_vm3, %v383_v62, %v387_v34  ;;  %v394_v38 = vsel %vm390_vm3, %v387_v34, %v383_v62  ;;  %523 = vmatprep.mubr.f32.mxu1 %v1828_v0 }
 0x176   : > { %v409_v41 = vmul.f32 %v400_v31, %v394_v38  ;;  %v410_v42 = vmul.f32 %v404_v32, %v392_v37  ;;  %v2072_v43 = vpop.permute.xlu0 %945  ;;  %v744_v31 = vsel %vm741_vm5, %v2038_v55, %v2036_v53  ;;  %v962_v37 = vrot.slane %v1761_v26, %v2044_v58 }
 0x177   : > { %v966_v38 = vrot.slane %v1761_v26, %v2046_v59 }
 0x178   : > { %v2074_v45 = vpop.permute.xlu1 %1067  ;;  %1744 = vmatmul.mubr.msk.f32.gmra.mxu1 %vm446_vm2, %v1742_v39  ;;  %564 = vmatprep.subr.mxu1 %v410_v42  ;;  %v760_v39 = vmul.f32 %v756_v24, %v742_v25 }
 0x179   : > { %565 = vmatpush1.msra.mxu1 %v409_v41  ;;  %600 = vmatprep.mubr.f32.mxu1 %v1828_v0 }
 0x17a   : > { %566 = vmatprep.subr.mxu1 %v408_v44  ;;  %v2085_v49 = vpop.permute.xlu0 %1065  ;;  %v1753_v44 = vld [vmem:[%s2358_s2 + $0x30] sm:$0xff] }
 0x17b   : > { %567 = vmatpush1.msra.mxu1 %v407_v46  ;;  %v1757_v46 = vld [vmem:[%s2358_s2 + $0x40] sm:$0xff] }
 0x17c   : > { %v620_v60 = vpop.permute.xlu1 %619  ;;  %1745 = vmatmul.mubr.msk.f32.vlgmr.msra.gmra.mxu1 %vm446_vm2, %v411_v48 }
 0x17d   : > { %v623_v62 = vsel %vm621_vm4, %v616_v20, %v620_v60  ;;  %v625_v63 = vsel %vm621_vm4, %v620_v60, %v616_v20  ;;  %606 = vmatprep.mubr.f32.mxu1 %v1828_v0  ;;  %v639_v20 = vmul.f32 %v632_v51, %v624_v2  ;;  %v1758_v2 = vld [vmem:[%s2358_s2 + $0x48] sm:$0xff] }
 0x17e   : > { %v641_v3 = vmul.f32 %v632_v51, %v625_v63  ;;  %v642_v4 = vmul.f32 %v636_v54, %v623_v62  ;;  %v2098_v11 = vpop.permute.xlu0 %1063  ;;  %v1086_v51 = vrot.slane %v1766_v40, %v2046_v59  ;;  %v1771_v54 = vld [vmem:[%s2361_s5 + $0xe] sm:$0x3] }
 0x17f   : > { %v1072_v62 = vsel %vm1071_vm7, %v2098_v11, %v2074_v45  ;;  %v1202_v22 = vrot.slane %v1771_v54, %v2044_v58  ;;  %v1768_v40 = vld [vmem:[%s2358_s2 + $0x68] sm:$0xff] }
 0x180   : > { %v2100_v21 = vpop.permute.xlu1 %1187  ;;  %1746 = vmatmul.mubr.msk.f32.gmra.mxu1 %vm446_vm2, %v412_v1  ;;  %680 = vmatprep.subr.mxu1 %v642_v4  ;;  %v1074_v4 = vsel %vm1071_vm7, %v2074_v45, %v2098_v11 }
 0x181   : > { %681 = vmatpush1.msra.mxu1 %v641_v3  ;;  %716 = vmatprep.mubr.f32.mxu1 %v1828_v0  ;;  %v1776_v3 = vld [vmem:[%s2361_s5 + $0x10] sm:$0x3]  ;;  %v1090_v25 = vmul.f32 %v1086_v51, %v1074_v4 }
 0x182   : > { %682 = vmatprep.subr.mxu1 %v640_v10  ;;  %v1186_v36 = vpop.permute.xlu0 %1185  ;;  %v1322_v45 = vrot.slane %v1776_v3, %v2044_v58  ;;  %v1326_v11 = vrot.slane %v1776_v3, %v2046_v59  ;;  %v1762_v58 = vld [vmem:[%s2358_s2 + $0x50] sm:$0xff] }
 0x183   : > { %683 = vmatpush1.msra.mxu1 %v639_v20 }
 0x184   : > { %v740_v28 = vpop.permute.xlu1 %739  ;;  %1750 = vmatmul.mubr.msk.f32.vlgmr.msra.gmra.mxu1 %vm446_vm2, %v1748_v50  ;;  %890 = vmatprep.subr.mxu1 %v1978_v35  ;;  %v1749_v35 = vld [vmem:[%s2358_s2 + $0x28] sm:$0xff]  ;;  %v1206_v50 = vrot.slane %v1771_v54, %v2046_v59  ;;  %v1767_v59 = vld [vmem:[%s2358_s2 + $0x60] sm:$0xff] }
 0x185   : > { %v743_v32 = vsel %vm741_vm5, %v2063_v30, %v740_v28  ;;  %v745_v34 = vsel %vm741_vm5, %v740_v28, %v2063_v30  ;;  %891 = vmatpush1.msra.mxu1 %v1974_v33  ;;  %722 = vmatprep.mubr.f32.mxu1 %v1828_v0  ;;  %v759_v30 = vmul.f32 %v752_v52, %v744_v31 }
 0x186   : > { %v761_v53 = vmul.f32 %v752_v52, %v745_v34  ;;  %v762_v55 = vmul.f32 %v756_v24, %v743_v32  ;;  %892 = vmatprep.subr.mxu1 %v1964_v29  ;;  %v952_v33 = vsel %vm951_vm6, %v2042_v57, %v2054_v23  ;;  %v1184_v60 = vpop.permute.xlu0 %1183  ;;  %v1089_v52 = vmul.f32 %v1082_v47, %v1072_v62 }
 0x187   : > { %893 = vmatpush1.msra.mxu1 %v1962_v27  ;;  %v954_v27 = vsel %vm951_vm6, %v2054_v23, %v2042_v57  ;;  %v1194_v31 = vsel %vm1191_vm8, %v2100_v21, %v1184_v60 }
 0x188   : > { %v950_v41 = vpop.permute.xlu1 %949  ;;  %1751 = vmatmul.mubr.msk.f32.gmra.mxu1 %vm446_vm2, %v1749_v35  ;;  %800 = vmatprep.subr.mxu0 %v762_v55  ;;  %v970_v48 = vmul.f32 %v966_v38, %v954_v27  ;;  %v1210_v55 = vmul.f32 %v1206_v50, %v1194_v31 }
 0x189   : > { %v953_v29 = vsel %vm951_vm6, %v2072_v43, %v950_v41  ;;  %v955_v42 = vsel %vm951_vm6, %v950_v41, %v2072_v43  ;;  %801 = vmatpush1.msra.mxu0 %v761_v53  ;;  %926 = vmatprep.mubr.f32.mxu1 %v1828_v0  ;;  %v969_v43 = vmul.f32 %v962_v37, %v952_v33  ;;  %v1763_v33 = vld [vmem:[%s2358_s2 + $0x58] sm:$0xff] }
 0x18a   : > { %v971_v57 = vmul.f32 %v962_v37, %v953_v29  ;;  %v972_v23 = vmul.f32 %v966_v38, %v955_v42  ;;  %802 = vmatprep.subr.mxu0 %v760_v39  ;;  %v1306_v32 = vpop.permute.xlu0 %1305 }
 0x18b   : > { %803 = vmatpush1.msra.mxu0 %v759_v30 }
 0x18c   : > { %v1070_v61 = vpop.permute.xlu1 %1069  ;;  %1755 = vmatmul.mubr.msk.f32.vlgmr.msra.gmra.mxu0 %vm446_vm2, %v1753_v44  ;;  %1759 = vmatmul.mubr.msk.f32.vlgmr.msra.gmra.mxu1 %vm446_vm2, %v1757_v46 }
 0x18d   : > { %v1073_v63 = vsel %vm1071_vm7, %v2085_v49, %v1070_v61  ;;  %v1075_v1 = vsel %vm1071_vm7, %v1070_v61, %v2085_v49  ;;  %1010 = vmatprep.subr.mxu0 %v972_v23  ;;  %842 = vmatprep.mubr.f32.mxu0 %v1828_v0  ;;  %v1754_v49 = vld [vmem:[%s2358_s2 + $0x38] sm:$0xff] }
 0x18e   : > { %v1091_v10 = vmul.f32 %v1082_v47, %v1073_v63  ;;  %v1092_v20 = vmul.f32 %v1086_v51, %v1075_v1  ;;  %1011 = vmatpush1.msra.mxu0 %v971_v57  ;;  %932 = vmatprep.mubr.f32.mxu1 %v1828_v0  ;;  %v1304_v41 = vpop.permute.xlu0 %1303  ;;  %v1772_v57 = vld [vmem:[%s2358_s2 + $0x70] sm:$0xff]  ;;  %v1773_v23 = vld [vmem:[%s2358_s2 + $0x78] sm:$0xff]  ;;  %v1778_v47 = vld [vmem:[%s2358_s2 + $0x88] sm:$0xff] }
 0x18f   : > { %1012 = vmatprep.subr.mxu0 %v970_v48 }
 0x190   : > { %1013 = vmatpush1.msra.mxu0 %v969_v43  ;;  %v1190_v24 = vpop.permute.xlu1 %1189  ;;  %1760 = vmatmul.mubr.msk.f32.gmra.mxu1 %vm446_vm2, %v1758_v2 }
 0x191   : > { %v1193_v26 = vsel %vm1191_vm8, %v1186_v36, %v1190_v24  ;;  %v1195_v28 = vsel %vm1191_vm8, %v1190_v24, %v1186_v36  ;;  %1756 = vmatmul.mubr.msk.f32.gmra.mxu0 %vm446_vm2, %v1754_v49  ;;  %1130 = vmatprep.subr.mxu1 %v1092_v20  ;;  %v1192_v36 = vsel %vm1191_vm8, %v1184_v60, %v2100_v21 }
 0x192   : > { %v1211_v34 = vmul.f32 %v1202_v22, %v1193_v26  ;;  %v1212_v35 = vmul.f32 %v1206_v50, %v1195_v28  ;;  %1131 = vmatpush1.msra.mxu1 %v1091_v10  ;;  %1046 = vmatprep.mubr.f32.mxu0 %v1828_v0  ;;  %v1209_v30 = vmul.f32 %v1202_v22, %v1192_v36 }
 0x193   : > { %1132 = vmatprep.subr.mxu1 %v1090_v25  ;;  %1166 = vmatprep.mubr.f32.mxu1 %v1828_v0 }
 0x194   : > { %1133 = vmatpush1.msra.mxu1 %v1089_v52  ;;  %v1310_v53 = vpop.permute.xlu1 %1309  ;;  %1250 = vmatprep.subr.mxu0 %v1212_v35 }
 0x195   : > { %v1313_v37 = vsel %vm1311_vm9, %v1306_v32, %v1310_v53  ;;  %v1315_v38 = vsel %vm1311_vm9, %v1310_v53, %v1306_v32  ;;  %1764 = vmatmul.mubr.msk.f32.vlgmr.msra.gmra.mxu0 %vm446_vm2, %v1762_v58  ;;  %1769 = vmatmul.mubr.msk.f32.vlgmr.msra.gmra.mxu1 %vm446_vm2, %v1767_v59 }
 0x196   : > { %v1331_v39 = vmul.f32 %v1322_v45, %v1313_v37  ;;  %v1332_v21 = vmul.f32 %v1326_v11, %v1315_v38  ;;  %1251 = vmatpush1.msra.mxu0 %v1211_v34  ;;  %1052 = vmatprep.mubr.f32.mxu0 %v1828_v0 }
 0x197   : > { %1252 = vmatprep.subr.mxu0 %v1210_v55  ;;  %1172 = vmatprep.mubr.f32.mxu1 %v1828_v0 }
 0x198   : > { %1253 = vmatpush1.msra.mxu0 %v1209_v30  ;;  %v1308_v27 = vpop.permute.xlu1 %1307  ;;  %1370 = vmatprep.subr.mxu1 %v1332_v21 }
 0x199   : > { %v1312_v29 = vsel %vm1311_vm9, %v1304_v41, %v1308_v27  ;;  %v1314_v42 = vsel %vm1311_vm9, %v1308_v27, %v1304_v41  ;;  %1765 = vmatmul.mubr.msk.f32.gmra.mxu0 %vm446_vm2, %v1763_v33  ;;  %1770 = vmatmul.mubr.msk.f32.gmra.mxu1 %vm446_vm2, %v1768_v40 }
 0x19a   : > { %v1329_v44 = vmul.f32 %v1322_v45, %v1312_v29  ;;  %v1330_v46 = vmul.f32 %v1326_v11, %v1314_v42  ;;  %1371 = vmatpush1.msra.mxu1 %v1331_v39  ;;  %1286 = vmatprep.mubr.f32.mxu0 %v1828_v0 }
 0x19b   : > { %1406 = vmatprep.mubr.f32.mxu1 %v1828_v0 }
 0x19c   : > { %1372 = vmatprep.subr.mxu1 %v1330_v46 }
 0x19d   : > { %1774 = vmatmul.mubr.msk.f32.vlgmr.msra.gmra.mxu0 %vm446_vm2, %v1772_v57  ;;  %1373 = vmatpush1.msra.mxu1 %v1329_v44 }
 0x19e   : > { %1779 = vmatmul.mubr.msk.f32.vlgmr.msra.gmra.mxu1 %vm446_vm2, %v1777_v56  ;;  %1292 = vmatprep.mubr.f32.mxu0 %v1828_v0 }
 0x19f   : > { %1412 = vmatprep.mubr.f32.mxu1 %v1828_v0 }
 0x1a1   : > { %1775 = vmatmul.mubr.msk.f32.gmra.mxu0 %vm446_vm2, %v1773_v23 }
 0x1a2   : > { %1780 = vmatmul.mubr.msk.f32.gmra.mxu1 %vm446_vm2, %v1778_v47  ;;  %1577 = vmatprep.mubr.f32.mxu0 %v1828_v0 }
 0x1a3   : > { %1607 = vmatprep.mubr.f32.mxu1 %v1828_v0 }
 0x234   : > { %v519_v43 = vpop.f32.mrf.mxu1 }
 0x236   : > { %v521_v48 = vpop.f32.mrf.mxu1 }
 0x238   : > { %v525_v51 = vpop.f32.mrf.mxu1 }
 0x23a   : > { %v527_v54 = vpop.f32.mrf.mxu1 }
 0x23c   : > { %v602_v60 = vpop.f32.mrf.mxu1 }
 0x23d   : > { %v603_v24 = vadd.f32 %v602_v60, %v519_v43 }
 0x23e   : > { %v604_v61 = vpop.f32.mrf.mxu1 }
 0x23f   : > { %v605_v50 = vadd.f32 %v604_v61, %v521_v48 }
 0x240   : > { %v608_v62 = vpop.f32.mrf.mxu1 }
 0x241   : > { %v609_v11 = vadd.f32 %v608_v62, %v525_v51 }
 0x242   : > { %v610_v63 = vpop.f32.mrf.mxu1 }
 0x243   : > { %v611_v32 = vadd.f32 %v610_v63, %v527_v54 }
 0x244   : > { %v718_v1 = vpop.f32.mrf.mxu1 }
 0x245   : > { %v729_v28 = vadd.f32 %v718_v1, %v603_v24 }
 0x246   : > { %v720_v2 = vpop.f32.mrf.mxu1 }
 0x247   : > { %v730_v25 = vadd.f32 %v720_v2, %v605_v50 }
 0x248   : > { %v724_v3 = vpop.f32.mrf.mxu1 }
 0x249   : > { %v731_v34 = vadd.f32 %v724_v3, %v609_v11 }
 0x24a   : > { %v726_v4 = vpop.f32.mrf.mxu1 }
 0x24b   : > { %v732_v53 = vadd.f32 %v726_v4, %v611_v32 }
 0x24c   : > { %v838_v10 = vpop.f32.mrf.mxu0  ;;  %v928_v20 = vpop.f32.mrf.mxu1 }
 0x24d   : > { %v849_v58 = vadd.f32 %v838_v10, %v729_v28 }
 0x24e   : > { %v840_v49 = vpop.f32.mrf.mxu0  ;;  %v930_v22 = vpop.f32.mrf.mxu1 }
 0x24f   : > { %v850_v35 = vadd.f32 %v840_v49, %v730_v25  ;;  %v939_v21 = vadd.f32 %v928_v20, %v849_v58  ;;  %v1441_v58 = vld [vmem:[%s2359_s3] sm:$0xff] }
 0x250   : > { %v934_v52 = vpop.f32.mrf.mxu1 }
 0x251   : > { %v844_v45 = vpop.f32.mrf.mxu0  ;;  %v940_v30 = vadd.f32 %v930_v22, %v850_v35 }
 0x252   : > { %v936_v26 = vpop.f32.mrf.mxu1  ;;  %v851_v55 = vadd.f32 %v844_v45, %v731_v34  ;;  %v1426_v45 = vpop.permute.xlu1 %1425 }
 0x253   : > { %v846_v31 = vpop.f32.mrf.mxu0 }
 0x254   : > { %v852_v39 = vadd.f32 %v846_v31, %v732_v53  ;;  %v941_v41 = vadd.f32 %v934_v52, %v851_v55  ;;  %v1431_v52 = vpop.permute.xlu0 %1430  ;;  %v1447_v53 = vld [vmem:[%s2359_s3 + $0x30] sm:$0xff] }
 0x255   : > { %v1048_v59 = vpop.f32.mrf.mxu0  ;;  %v1168_v36 = vpop.f32.mrf.mxu1  ;;  %v1443_v55 = vld [vmem:[%s2359_s3 + $0x10] sm:$0xff] }
 0x256   : > { %v1059_v29 = vadd.f32 %v1048_v59, %v939_v21  ;;  %v942_v44 = vadd.f32 %v936_v26, %v852_v39  ;;  %v1446_v59 = vld [vmem:[%s2359_s3 + $0x28] sm:$0xff]  ;;  %v1457_v21 = vpop.permute.xlu1 %1456 }
 0x257   : > { %v1050_v37 = vpop.f32.mrf.mxu0  ;;  %v1170_v38 = vpop.f32.mrf.mxu1 }
 0x258   : > { %v1060_v27 = vadd.f32 %v1050_v37, %v940_v30  ;;  %v1179_v48 = vadd.f32 %v1168_v36, %v1059_v29  ;;  %v1442_v36 = vld [vmem:[%s2359_s3 + $0x8] sm:$0xff]  ;;  %v1448_v37 = vld [vmem:[%s2359_s3 + $0x38] sm:$0xff]  ;;  %v1445_v30 = vld [vmem:[%s2359_s3 + $0x20] sm:$0xff]  ;;  %v1452_v39 = vpop.permute.xlu0 %1451 }
 0x259   : > { %v1054_v33 = vpop.f32.mrf.mxu0  ;;  %v1174_v40 = vpop.f32.mrf.mxu1 }
 0x25a   : > { %v1061_v46 = vadd.f32 %v1054_v33, %v941_v41  ;;  %v1180_v23 = vadd.f32 %v1170_v38, %v1060_v27  ;;  %v1444_v38 = vld [vmem:[%s2359_s3 + $0x18] sm:$0xff] }
 0x25b   : > { %v1056_v42 = vpop.f32.mrf.mxu0  ;;  %v1176_v57 = vpop.f32.mrf.mxu1 }
 0x25c   : > { %v1062_v47 = vadd.f32 %v1056_v42, %v942_v44  ;;  %v1181_v54 = vadd.f32 %v1174_v40, %v1061_v46  ;;  %v1462_v33 = vpop.permute.xlu0 %1461  ;;  %v2306_v40 = vpop.permute.xlu1 %1466 }
 0x25d   : > { %v1288_v56 = vpop.f32.mrf.mxu0 }
 0x25e   : > { %v1408_v43 = vpop.f32.mrf.mxu1  ;;  %v1299_v62 = vadd.f32 %v1288_v56, %v1179_v48  ;;  %v1182_v1 = vadd.f32 %v1176_v57, %v1062_v47 }
 0x25f   : > { %v1290_v51 = vpop.f32.mrf.mxu0 }
 0x260   : > { %v1300_v60 = vadd.f32 %v1290_v51, %v1180_v23  ;;  %v1410_v61 = vpop.f32.mrf.mxu1  ;;  %v1419_v50 = vadd.f32 %v1408_v43, %v1299_v62  ;;  %v2308_v41 = vpop.permute.xlu0 %1471 }
 0x261   : > { %v1294_v63 = vpop.f32.mrf.mxu0  ;;  %v1477_v27 = vpop.permute.xlu1 %1476 }
 0x262   : > { %v1301_v2 = vadd.f32 %v1294_v63, %v1181_v54  ;;  %v1414_v3 = vpop.f32.mrf.mxu1  ;;  %v1420_v10 = vadd.f32 %v1410_v61, %v1300_v60  ;;  %v1433_v28 = vadd.f32 %v1426_v45, %v1419_v50 }
 0x263   : > { %v1296_v4 = vpop.f32.mrf.mxu0 }
 0x264   : > { %v1302_v20 = vadd.f32 %v1296_v4, %v1182_v1  ;;  %v1421_v49 = vadd.f32 %v1414_v3, %v1301_v2  ;;  %v1416_v22 = vpop.f32.mrf.mxu1  ;;  %v1434_v25 = vadd.f32 %v1426_v45, %v1420_v10  ;;  %v1437_v35 = vmax.f32 %v1433_v28, 0.0  ;;  %v1482_v54 = vpop.permute.xlu0 %1481 }
 0x265   : > { %v1487_v10 = vpop.permute.xlu1 %1486 }
 0x266   : > { %v1422_v24 = vadd.f32 %v1416_v22, %v1302_v20  ;;  %v1435_v11 = vadd.f32 %v1431_v52, %v1421_v49  ;;  %v1438_v34 = vmax.f32 %v1434_v25, 0.0 }
 0x268   : > { %v1436_v26 = vadd.f32 %v1431_v52, %v1422_v24  ;;  %v1439_v32 = vmax.f32 %v1435_v11, 0.0 }
 0x26a   : > { %v1440_v31 = vmax.f32 %v1436_v26, 0.0 }
 0x26c   : > { %1541 = vmatprep.subr.mxu0 %v1440_v31  ;;  %1793 = vmatprep.subr.mxu1 %v1440_v31 }
 0x26d   : > { %1542 = vmatpush1.msra.mxu0 %v1439_v32  ;;  %1795 = vmatpush1.msra.mxu1 %v1439_v32 }
 0x26e   : > { %1543 = vmatprep.subr.mxu0 %v1438_v34  ;;  %1794 = vmatprep.subr.mxu1 %v1438_v34 }
 0x26f   : > { %1544 = vmatpush1.msra.mxu0 %v1437_v35  ;;  %1796 = vmatpush1.msra.mxu1 %v1437_v35 }
 0x270   : > { %1781 = vmatmul.mubr.msk.f32.vlgmr.msra.gmra.mxu0 %vm446_vm2, %v1441_v58  ;;  %1786 = vmatmul.mubr.msk.f32.vlgmr.msra.gmra.mxu1 %vm446_vm2, %v1446_v59 }
 0x271   : > { %1583 = vmatprep.mubr.f32.mxu0 %v1828_v0  ;;  %1613 = vmatprep.mubr.f32.mxu1 %v1828_v0 }
 0x274   : > { %1782 = vmatmul.mubr.msk.f32.gmra.mxu0 %vm446_vm2, %v1442_v36  ;;  %1787 = vmatmul.mubr.msk.f32.gmra.mxu1 %vm446_vm2, %v1447_v53 }
 0x275   : > { %1589 = vmatprep.mubr.f32.mxu0 %v1828_v0  ;;  %1619 = vmatprep.mubr.f32.mxu1 %v1828_v0 }
 0x278   : > { %1783 = vmatmul.mubr.msk.f32.gmra.mxu0 %vm446_vm2, %v1443_v55  ;;  %1788 = vmatmul.mubr.msk.f32.gmra.mxu1 %vm446_vm2, %v1448_v37 }
 0x279   : > { %1595 = vmatprep.mubr.f32.mxu0 %v1828_v0 }
 0x27c   : > { %1784 = vmatmul.mubr.msk.f32.gmra.mxu0 %vm446_vm2, %v1444_v38 }
 0x27d   : > { %1601 = vmatprep.mubr.f32.mxu0 %v1828_v0 }
 0x280   : > { %1785 = vmatmul.mubr.msk.f32.gmra.mxu0 %vm446_vm2, %v1445_v30 }
 0x330   : > { %v1579_v29 = vpop.f32.mrf.mxu0  ;;  %v1609_v42 = vpop.f32.mrf.mxu1 }
 0x331   : > { %v1580_v44 = vadd.f32 %v1579_v29, %v1452_v39  ;;  %v1610_v46 = vadd.f32 %v1609_v42, %v1477_v27 }
 0x332   : > { %v1581_v0 = vpop.f32.mrf.mxu0  ;;  %v1611_v57 = vpop.f32.mrf.mxu1 }
 0x333   : > { %v1626_v56 = vmax.f32 %v1580_v44, 0.0  ;;  %v1636_v23 = vmax.f32 %v1610_v46, 0.0  ;;  %v1582_v47 = vadd.f32 %v1581_v0, %v1452_v39  ;;  %v1612_v43 = vadd.f32 %v1611_v57, %v1477_v27  ;;  %v1818_v46 = vld [vmem:[%s1897_s30 + $0x40] sm:$0xff] }
 0x334   : > { %v1585_v48 = vpop.f32.mrf.mxu0  ;;  %v1615_v51 = vpop.f32.mrf.mxu1 }
 0x335   : > { %v1642_v60 = vadd.f32 %v1626_v56, %v1949_v19  ;;  %v1652_v61 = vadd.f32 %v1636_v23, %v1915_v9  ;;  %v1627_v62 = vmax.f32 %v1582_v47, 0.0  ;;  %v1637_v63 = vmax.f32 %v1612_v43, 0.0  ;;  %v1819_v56 = vld [vmem:[%s1897_s30 + $0x48] sm:$0xff] }
 0x336   : > { %v1586_v1 = vadd.f32 %v1585_v48, %v1457_v21  ;;  %v1616_v2 = vadd.f32 %v1615_v51, %v1482_v54  ;;  %v1587_v3 = vpop.f32.mrf.mxu0  ;;  %v1617_v4 = vpop.f32.mrf.mxu1 }
 0x337   : > { %1658 = vst [vmem:[%s2315_s9] sm:$0xff] %v1642_v60  ;;  %1668 = vst [vmem:[%s2315_s9 + $0x50] sm:$0xff] %v1652_v61  ;;  %v1643_v20 = vadd.f32 %v1627_v62, %v1945_v18  ;;  %v1653_v49 = vadd.f32 %v1637_v63, %v1911_v8  ;;  %v1588_v22 = vadd.f32 %v1587_v3, %v1457_v21 }
 0x338   : > { %v1618_v50 = vadd.f32 %v1617_v4, %v1482_v54  ;;  %v1628_v19 = vmax.f32 %v1586_v1, 0.0  ;;  %v1638_v52 = vmax.f32 %v1616_v2, 0.0  ;;  %v1591_v9 = vpop.f32.mrf.mxu0  ;;  %v1621_v24 = vpop.f32.mrf.mxu1 }
 0x339   : > { %1659 = vst [vmem:[%s2315_s9 + $0x8] sm:$0xff] %v1643_v20  ;;  %1669 = vst [vmem:[%s2315_s9 + $0x58] sm:$0xff] %v1653_v49  ;;  %v1629_v45 = vmax.f32 %v1588_v22, 0.0  ;;  %v1592_v25 = vadd.f32 %v1591_v9, %v1462_v33  ;;  %v1622_v26 = vadd.f32 %v1621_v24, %v1487_v10 }
 0x33a   : > { %v1639_v11 = vmax.f32 %v1618_v50, 0.0  ;;  %v1644_v18 = vadd.f32 %v1628_v19, %v1941_v17  ;;  %v1654_v8 = vadd.f32 %v1638_v52, %v1907_v7  ;;  %v1593_v28 = vpop.f32.mrf.mxu0  ;;  %v1623_v31 = vpop.f32.mrf.mxu1 }
 0x33b   : > { %v1645_v32 = vadd.f32 %v1629_v45, %v1937_v16  ;;  %v1630_v35 = vmax.f32 %v1592_v25, 0.0  ;;  %v1640_v58 = vmax.f32 %v1622_v26, 0.0  ;;  %v1594_v59 = vadd.f32 %v1593_v28, %v1462_v33 }
 0x33c   : > { %v1655_v34 = vadd.f32 %v1639_v11, %v1904_v6  ;;  %1660 = vst [vmem:[%s2315_s9 + $0x10] sm:$0xff] %v1644_v18  ;;  %1670 = vst [vmem:[%s2315_s9 + $0x60] sm:$0xff] %v1654_v8  ;;  %v1624_v36 = vadd.f32 %v1623_v31, %v1487_v10  ;;  %v1597_v53 = vpop.f32.mrf.mxu0 }
 0x33d   : > { %1661 = vst [vmem:[%s2315_s9 + $0x18] sm:$0xff] %v1645_v32  ;;  %v1646_v7 = vadd.f32 %v1630_v35, %v1933_v15  ;;  %v1656_v17 = vadd.f32 %v1640_v58, %v1901_v5  ;;  %v1598_v16 = vadd.f32 %v1597_v53, %v2306_v40  ;;  %v1631_v6 = vmax.f32 %v1594_v59, 0.0  ;;  %v1817_v15 = vld [vmem:[%s1897_s30 + $0x78] sm:$0xff] }
 0x33e   : > { %1671 = vst [vmem:[%s2315_s9 + $0x68] sm:$0xff] %v1655_v34  ;;  %v1641_v55 = vmax.f32 %v1624_v36, 0.0  ;;  %v1599_v37 = vpop.f32.mrf.mxu0 }
 0x33f   : > { %1662 = vst [vmem:[%s2315_s9 + $0x20] sm:$0xff] %v1646_v7  ;;  %1672 = vst [vmem:[%s2315_s9 + $0x70] sm:$0xff] %v1656_v17  ;;  %v1632_v38 = vmax.f32 %v1598_v16, 0.0  ;;  %v1600_v30 = vadd.f32 %v1599_v37, %v2306_v40  ;;  %v1647_v39 = vadd.f32 %v1631_v6, %v1929_v14 }
 0x340   : > { %v1657_v21 = vadd.f32 %v1817_v15, %v1641_v55  ;;  %v1603_v5 = vpop.f32.mrf.mxu0 }
 0x341   : > { %v1648_v33 = vadd.f32 %v1632_v38, %v1926_v13  ;;  %v1633_v27 = vmax.f32 %v1600_v30, 0.0  ;;  %v1604_v29 = vadd.f32 %v1603_v5, %v2308_v41  ;;  %1663 = vst [vmem:[%s2315_s9 + $0x28] sm:$0xff] %v1647_v39 }
 0x342   : > { %1673 = vst [vmem:[%s2315_s9 + $0x78] sm:$0xff] %v1657_v21  ;;  %v1605_v42 = vpop.f32.mrf.mxu0 }
 0x343   : > { %1664 = vst [vmem:[%s2315_s9 + $0x30] sm:$0xff] %v1648_v33  ;;  %v1649_v40 = vadd.f32 %v1633_v27, %v1923_v12  ;;  %v1634_v44 = vmax.f32 %v1604_v29, 0.0  ;;  %v1606_v14 = vadd.f32 %v1605_v42, %v2308_v41 }
 0x345   : > { %1665 = vst [vmem:[%s2315_s9 + $0x38] sm:$0xff] %v1649_v40  ;;  %v1650_v0 = vadd.f32 %v1818_v46, %v1634_v44  ;;  %v1635_v57 = vmax.f32 %v1606_v14, 0.0 }
 0x347   : > { %1666 = vst [vmem:[%s2315_s9 + $0x40] sm:$0xff] %v1650_v0  ;;  %v1651_v13 = vadd.f32 %v1819_v56, %v1635_v57 }
 0x349   : > { %1667 = vst [vmem:[%s2315_s9 + $0x48] sm:$0xff] %v1651_v13 }
 0x34a PF: > { %s16_s21 = sadd.s32 1, %s1826_s21  }
 0x34b   : > { %p13_p4 = scmp.ge.s32.totalorder %s16_s21, 4  }
 0x34d   :  { %15 = sbr.rel (!%p13_p4) target bundleno = 1 (0x1), region = 89 }

</bundles_post_ra>
